<compile_context>
chip_gen: v7x
topology: tpu7x:2x2x1
jax: 0.10.0
libtpu: 0.0.40
codegen_flags: <defaults>
</compile_context>

<pallas_src>
import functools
import math

import jax
import jax.numpy as jnp
from jax.experimental import pallas as pl
from jax.experimental.pallas import tpu as pltpu


def _round_up(x, m):
    return ((x + m - 1) // m) * m


def _attn_kernel(x_ref, w_ref, b_ref, o_ref, *, bt, seq, dq_pad, dv_pad, attn_dtype):
    """One grid step handles `bt` batch elements (bt*seq rows).

    x_ref : (bt*seq, C)                 activations (flattened rows)
    w_ref : (C, 2*dq_pad + dv_pad)      fused, lane-padded [Wq*0.125 | Wk | Wv]
    b_ref : (1, 2*dq_pad + dv_pad)      fused, lane-padded [bq*0.125 | bk | bv]  (f32)
    o_ref : (bt*seq, dv_pad)            attention output (lane-dense 128-wide slab)
    """
    n = bt * seq
    dt = attn_dtype

    x = x_ref[...]                                                  # (n, C)

    # Single fused QKV projection, f32 accumulation, bias add in f32.
    qkv = jnp.dot(x, w_ref[...], preferred_element_type=jnp.float32) + b_ref[...]

    # Lane-aligned 128-wide slices (scale /8 already folded into Wq/bq in the wrapper).
    # reshape (n, D) -> (bt, seq, D) keeps the lane dim; layout-preserving when seq % 8 == 0.
    q = qkv[:, :dq_pad].astype(dt).reshape(bt, seq, dq_pad)
    k = qkv[:, dq_pad:2 * dq_pad].astype(dt).reshape(bt, seq, dq_pad)
    v = qkv[:, 2 * dq_pad:].astype(dt).reshape(bt, seq, dv_pad)

    # Batched Q @ K^T: contracting dim fed straight to the MXU, no explicit transpose.
    sim = jnp.einsum("bqd,bkd->bqk", q, k,
                     preferred_element_type=jnp.float32)            # (bt, seq, seq) f32

    # Numerically-stable softmax along the last axis (f32 math, EUP reciprocal).
    m = jnp.max(sim, axis=-1, keepdims=True)
    p = jnp.exp(sim - m)
    p = p * pl.reciprocal(jnp.sum(p, axis=-1, keepdims=True), approx=False)

    # attn @ V, f32 accumulation; padded V columns stay zero.
    out = jnp.einsum("bqk,bkd->bqd", p.astype(dt), v,
                     preferred_element_type=jnp.float32)            # (bt, seq, dv_pad)

    # Lane-dense (128-wide) store: unmasked vst, no partial stores.
    o_ref[...] = out.reshape(n, dv_pad).astype(o_ref.dtype)


def self_attention_pallas(x, wq_t, bq, wk_t, bk, wv_t, bv, *, attn_matmul_dtype=None):
    """x: (B, S, C); w*_t: (C, D) pre-transposed nn.Linear weights; b*: (D,).

    attn_matmul_dtype: dtype for the two attention einsum operands (accumulation stays f32).
      Default = x.dtype.  On v6e/v7x, passing jnp.bfloat16 for f32 inputs gives ~4.7x MXU rate
      when the accuracy budget allows.

    Returns (B, S, n_head*d_v)  (squeezed to (B, S) if n_head*d_v == 1, matching .squeeze(2)).
    """
    B, S, C = x.shape
    dq = wq_t.shape[1]
    dv = wv_t.shape[1]
    dt = x.dtype
    attn_dt = dt if attn_matmul_dtype is None else attn_matmul_dtype

    # --- Fused, lane-padded weights (one-time wrapper transform) ---------------------------
    dq_pad = _round_up(dq, 128)
    dv_pad = _round_up(dv, 128)
    d_tot = 2 * dq_pad + dv_pad

    scale = jnp.asarray(0.125, wq_t.dtype)          # the module's hard-coded /8, folded into Wq/bq

    def pad_cols(w, d_pad):
        return jnp.pad(w, ((0, 0), (0, d_pad - w.shape[1])))

    def pad_vec(b, d_pad):
        return jnp.pad(b, (0, d_pad - b.shape[0]))

    w_qkv = jnp.concatenate(
        [pad_cols(wq_t * scale, dq_pad), pad_cols(wk_t, dq_pad), pad_cols(wv_t, dv_pad)],
        axis=1).astype(dt)                                          # (C, d_tot)
    b_qkv = jnp.concatenate(
        [pad_vec(bq * scale, dq_pad), pad_vec(bk, dq_pad), pad_vec(bv, dv_pad)],
        axis=0).reshape(1, d_tot).astype(jnp.float32)               # (1, d_tot), added in f32

    # --- Choose bt (batch elements per grid step) -------------------------------------------
    itemsize = jnp.dtype(dt).itemsize

    def _step_bytes(bt_):
        n = bt_ * S
        xb = n * C * itemsize                    # X tile
        ob = n * dv_pad * itemsize               # out tile
        wb = C * d_tot * itemsize + d_tot * 4    # fused W + bias
        qkvb = n * d_tot * 4 + 3 * n * max(dq_pad, dv_pad) * jnp.dtype(attn_dt).itemsize
        simb = 2 * bt_ * S * S * 4               # sim + p (f32)
        accb = n * dv_pad * 4                    # attn@V f32 accumulator
        return 2 * (xb + ob + wb) + qkvb + simb + accb   # x2 for double-buffered pipelining

    ROW_TARGET = 256                             # fill v6e/v7x 256-wide MXU M dim per step
    VMEM_BUDGET = 40 * 1024 * 1024               # stays safe on v7x (64 MiB physical VMEM)

    bt = max(1, min(B, ROW_TARGET // max(1, S)))
    if B >= 2:
        bt = min(bt, -(-B // 2))                 # keep >= 2 grid steps (v7x has 2 TensorCores)
    while bt > 1 and _step_bytes(bt) > VMEM_BUDGET:
        bt //= 2
    # keep bt*S sublane-aligned (multiple of 8) so the 2-D row blocks need no relayout
    g = 8 // math.gcd(S, 8)
    bt = max(g, (bt // g) * g)

    b_pad = _round_up(B, bt)
    xp = x if b_pad == B else jnp.pad(x, ((0, b_pad - B), (0, 0), (0, 0)))
    x2 = xp.reshape(b_pad * S, C)                # free HBM reshape: identical layout
    grid = (b_pad // bt,)

    vmem_limit = int(min(48 * 1024 * 1024, max(32 * 1024 * 1024, 2 * _step_bytes(bt))))

    kernel = functools.partial(_attn_kernel, bt=bt, seq=S, dq_pad=dq_pad, dv_pad=dv_pad,
                               attn_dtype=attn_dt)

    out = pl.pallas_call(
        kernel,
        out_shape=jax.ShapeDtypeStruct((b_pad * S, dv_pad), dt),
        grid_spec=pltpu.PrefetchScalarGridSpec(
            num_scalar_prefetch=0,
            grid=grid,
            in_specs=[
                pl.BlockSpec((bt * S, C), lambda i: (i, 0)),        # X rows for this step
                pl.BlockSpec((C, d_tot), lambda i: (0, 0)),         # fused Wqkv (grid-invariant)
                pl.BlockSpec((1, d_tot), lambda i: (0, 0)),         # fused bias (grid-invariant)
            ],
            out_specs=pl.BlockSpec((bt * S, dv_pad), lambda i: (i, 0)),
        ),
        compiler_params=pltpu.CompilerParams(
            dimension_semantics=("parallel",),
            vmem_limit_bytes=vmem_limit,
        ),
    )(x2, w_qkv, b_qkv)

    out = out.reshape(b_pad, S, dv_pad)[:B, :, :dv]
    # torch .squeeze(2): only removes the last dim if n_head*d_v == 1
    if dv == 1:
        out = out[..., 0]
    return out


def _reference(x, wq_t, bq, wk_t, bk, wv_t, bv):
    q = x @ wq_t + bq
    k = x @ wk_t + bk
    v = x @ wv_t + bv
    sim = jnp.einsum("bqd,bkd->bqk", q, k) / 8.0
    attn = jax.nn.softmax(sim, axis=-1)
    return jnp.einsum("bqk,bkd->bqd", attn, v)


if __name__ == "__main__":
    # Shapes consistent with the module: in_channel=32, n_head=4, d_k=16, d_v=16.
    # B=32, S=8 -> bt=16 batches (128 rows) per grid step, grid of 2 steps (both v7x TCs busy).
    B, S, C = 32, 8, 32
    n_head, d_k, d_v = 4, 16, 16
    Dq, Dv = n_head * d_k, n_head * d_v

    key = jax.random.PRNGKey(0)
    kx, kq, kbq, kk, kbk, kv, kbv = jax.random.split(key, 7)

    x = jax.random.normal(kx, (B, S, C), dtype=jnp.float32)
    # Deterministic synthetic parameters (nn.Linear-like, stored transposed as (C, D))
    scale = 1.0 / jnp.sqrt(jnp.float32(C))
    wq_t = jax.random.uniform(kq, (C, Dq), jnp.float32, -scale, scale)
    bq = jax.random.uniform(kbq, (Dq,), jnp.float32, -scale, scale)
    wk_t = jax.random.uniform(kk, (C, Dq), jnp.float32, -scale, scale)
    bk = jax.random.uniform(kbk, (Dq,), jnp.float32, -scale, scale)
    wv_t = jax.random.uniform(kv, (C, Dv), jnp.float32, -scale, scale)
    bv = jax.random.uniform(kbv, (Dv,), jnp.float32, -scale, scale)

    out = self_attention_pallas(x, wq_t, bq, wk_t, bk, wv_t, bv)
    out = jax.block_until_ready(out)

    ref = _reference(x, wq_t, bq, wk_t, bk, wv_t, bv)
    assert out.shape == (B, S, Dv), out.shape
    max_err = float(jnp.max(jnp.abs(out - ref)))
    # different accumulation order of the fused/padded matmuls -> allow small slack
    assert jnp.allclose(out, ref, atol=1e-2, rtol=1e-2), max_err

    print("KERNEL_OK")
</pallas_src>

<mosaic_0001>
module attributes {stable_mosaic.version = 11 : i64} {
  func.func @_attn_kernel(%arg0: i32, %arg1: memref<128x32xf32, #tpu.memory_space<vmem>>, %arg2: memref<32x384xf32, #tpu.memory_space<vmem>>, %arg3: memref<1x384xf32, #tpu.memory_space<vmem>>, %arg4: memref<128x128xf32, #tpu.memory_space<vmem>>) attributes {dimension_semantics = [#tpu.dimension_semantics<parallel>], iteration_bounds = array<i64: 2>, scalar_prefetch = 0 : i64, scratch_operands = 0 : i64, tpu.core_type = #tpu.core_type<tc>, window_params = [{transform_indices = @transform_0, window_bounds = array<i64: 128, 32>}, {pipeline_mode = #tpu.pipeline_mode<synchronous>, transform_indices = @transform_1, window_bounds = array<i64: 32, 384>}, {pipeline_mode = #tpu.pipeline_mode<synchronous>, transform_indices = @transform_2, window_bounds = array<i64: 1, 384>}, {transform_indices = @transform_3, window_bounds = array<i64: 128, 128>}]} {
    %c0 = arith.constant 0 : index
    %c0_0 = arith.constant 0 : index
    %0 = vector.load %arg1[%c0, %c0_0] : memref<128x32xf32, #tpu.memory_space<vmem>>, vector<128x32xf32>
    %c0_1 = arith.constant 0 : index
    %c0_2 = arith.constant 0 : index
    %1 = vector.load %arg2[%c0_1, %c0_2] : memref<32x384xf32, #tpu.memory_space<vmem>>, vector<32x384xf32>
    %cst = arith.constant dense<0.000000e+00> : vector<128x384xf32>
    %2 = tpu.matmul %0, %1, %cst {dimension_numbers = #tpu.dot_dimension_numbers<[1], [0], [0], [1], [0, 0, 1, 1], [], []>} : vector<128x32xf32>, vector<32x384xf32>, vector<128x384xf32> -> vector<128x384xf32>
    %c0_3 = arith.constant 0 : index
    %c0_4 = arith.constant 0 : index
    %3 = vector.load %arg3[%c0_3, %c0_4] : memref<1x384xf32, #tpu.memory_space<vmem>>, vector<1x384xf32>
    %4 = vector.broadcast %3 : vector<1x384xf32> to vector<128x384xf32>
    %5 = arith.addf %2, %4 : vector<128x384xf32>
    %6 = vector.extract_strided_slice %5 {offsets = [0, 0], sizes = [128, 128], strides = [1, 1]} : vector<128x384xf32> to vector<128x128xf32>
    %7 = vector.shape_cast %6 : vector<128x128xf32> to vector<16x8x128xf32>
    %8 = vector.extract_strided_slice %5 {offsets = [0, 128], sizes = [128, 128], strides = [1, 1]} : vector<128x384xf32> to vector<128x128xf32>
    %9 = vector.shape_cast %8 : vector<128x128xf32> to vector<16x8x128xf32>
    %10 = vector.extract_strided_slice %5 {offsets = [0, 256], sizes = [128, 128], strides = [1, 1]} : vector<128x384xf32> to vector<128x128xf32>
    %11 = vector.shape_cast %10 : vector<128x128xf32> to vector<16x8x128xf32>
    "tpu.trace_start"() <{level = 10 : i32, message = "bqd,bkd->bqk"}> : () -> ()
    %cst_5 = arith.constant dense<0.000000e+00> : vector<16x8x8xf32>
    %12 = tpu.matmul %7, %9, %cst_5 {dimension_numbers = #tpu.dot_dimension_numbers<[2], [2], [1], [1], [0, 0, 0, 1, 1, 1], [0], [0]>} : vector<16x8x128xf32>, vector<16x8x128xf32>, vector<16x8x8xf32> -> vector<16x8x8xf32>
    "tpu.trace_stop"() : () -> ()
    %cst_6 = arith.constant dense<0xFF800000> : vector<16x8xf32>
    %13 = vector.multi_reduction <maximumf>, %12, %cst_6 [2] : vector<16x8x8xf32> to vector<16x8xf32>
    %14 = vector.shape_cast %13 : vector<16x8xf32> to vector<16x8x1xf32>
    %15 = vector.broadcast %14 : vector<16x8x1xf32> to vector<16x8x8xf32>
    %16 = arith.subf %12, %15 : vector<16x8x8xf32>
    %17 = math.exp %16 : vector<16x8x8xf32>
    %cst_7 = arith.constant dense<0.000000e+00> : vector<16x8xf32>
    %18 = vector.multi_reduction <add>, %17, %cst_7 [2] : vector<16x8x8xf32> to vector<16x8xf32>
    %19 = vector.shape_cast %18 : vector<16x8xf32> to vector<16x8x1xf32>
    %20 = tpu.reciprocal %19 : vector<16x8x1xf32> -> vector<16x8x1xf32>
    %21 = vector.broadcast %20 : vector<16x8x1xf32> to vector<16x8x8xf32>
    %22 = arith.mulf %17, %21 : vector<16x8x8xf32>
    "tpu.trace_start"() <{level = 10 : i32, message = "bqk,bkd->bqd"}> : () -> ()
    %cst_8 = arith.constant dense<0.000000e+00> : vector<16x8x128xf32>
    %23 = tpu.matmul %22, %11, %cst_8 {dimension_numbers = #tpu.dot_dimension_numbers<[2], [1], [1], [2], [0, 0, 0, 1, 1, 2], [0], [0]>} : vector<16x8x8xf32>, vector<16x8x128xf32>, vector<16x8x128xf32> -> vector<16x8x128xf32>
    "tpu.trace_stop"() : () -> ()
    %24 = vector.shape_cast %23 : vector<16x8x128xf32> to vector<128x128xf32>
    %c0_9 = arith.constant 0 : index
    %c0_10 = arith.constant 0 : index
    %25 = vector.load %arg4[%c0_9, %c0_10] : memref<128x128xf32, #tpu.memory_space<vmem>>, vector<128x128xf32>
    tpu.vector_store %arg4[%c0_9, %c0_10], %24 {strides = array<i32>} : memref<128x128xf32, #tpu.memory_space<vmem>>, vector<128x128xf32>,
    return
  }
  func.func @transform_0(%arg0: i32) -> (i32, i32) {
    %c0_i32 = arith.constant 0 : i32
    %c0_i32_0 = arith.constant 0 : i32
    return %arg0, %c0_i32 : i32, i32
  }
  func.func @transform_1(%arg0: i32) -> (i32, i32) {
    %c0_i32 = arith.constant 0 : i32
    %c0_i32_0 = arith.constant 0 : i32
    %c0_i32_1 = arith.constant 0 : i32
    return %c0_i32, %c0_i32_0 : i32, i32
  }
  func.func @transform_2(%arg0: i32) -> (i32, i32) {
    %c0_i32 = arith.constant 0 : i32
    %c0_i32_0 = arith.constant 0 : i32
    %c0_i32_1 = arith.constant 0 : i32
    return %c0_i32, %c0_i32_0 : i32, i32
  }
  func.func @transform_3(%arg0: i32) -> (i32, i32) {
    %c0_i32 = arith.constant 0 : i32
    %c0_i32_0 = arith.constant 0 : i32
    return %arg0, %c0_i32 : i32, i32
  }
}

</mosaic_0001>

<bundles_post_ra>
// kernel: tpu_custom_call.1
= control target key start
LH: loop header
LB: loop body
LE: loop exit
PB: predicated region body
PF: predicated region fallthrough
CT: control target
= control target key end

     0   :  { %8 = vsyncpa [#allocation3], 0  ;;  %s4282_s0 = inlined_call_operand.vmem [shape: f32[256,32], index: 0, kind: input, shape index: {}]   ;;  %s4283_s1 = inlined_call_operand.vmem [shape: f32[32,384], index: 1, kind: input, shape index: {}]   ;;  %s4284_s2 = inlined_call_operand.vmem [shape: f32[1,384], index: 2, kind: input, shape index: {}]   ;;  %s4285_s3 = inlined_call_operand.hbm [shape: f32[256,128], index: 3, kind: output, shape index: {}]  }
   0x1   :  { %10 = vsyncpa [#allocation3 + $0x1], 0  ;;  %s3678_s12 = smov 0   ;;  %s3680_s13 = smov 0  }
   0x2   :  { %s3682_s14 = smov 0   ;;  %s3684_s15 = smov 0  }
   0x3 LB: > { %s3699_s16 = sadd.s32 4294967295, %s3651_s15   ;;  %s3129_s17 = sadd.s32 4294967294, %s3651_s15   ;;  %s3651_s15 = sphi %s3684_s15, %s4291_s15   ;;  %s3647_s14 = sphi %s3682_s14, %s4290_s14   ;;  %s3643_s13 = sphi %s3680_s13, %s4289_s13   ;;  %s3639_s12 = sphi %s3678_s12, %s4288_s12  }
   0x4   : > { %s3703_s18 = sadd.s32 1, %s3651_s15   ;;  %s91_s19 = sadd.s32 1, %s3647_s14 }
   0x5   : > { %s88_s20 = ssub.s32 %s3651_s15, %s3703_s18  ;;  %p101_p0 = scmp.ne.s32.totalorder %s3647_s14, %s3643_s13 }
   0x6   : > { %p89_p1 = scmp.eq.s32.totalorder %s88_s20, 0  ;;  %p102_p2 = scmp.eq.s32.totalorder %s3699_s16, 1 }
   0x7   : > { %p107_p3 = scmp.ne.s32.totalorder %s3643_s13, %s3639_s12  ;;  %p108_p4 = scmp.eq.s32.totalorder %s3129_s17, 1 }
   0x8   : > { %s3714_s21 = scalar_select %p89_p1, %s3647_s14, %s91_s19  }
   0x9   : > { %p3716_p5 = por %p102_p2, %p101_p0  ;;  %p3720_p6 = por %p108_p4, %p107_p3 }
   0xa   : > { %p3132_p7 = scmp.ge.s32.totalorder %s3651_s15, 1  ;;  %p141_p8 = scmp.lt.s32.totalorder %s3651_s15, 3 }
   0xc   : > { %p142_p9 = pnand %p3132_p7, %p141_p8 }
   0xd   : > { %v189_v0 = vld [vmem:[%s4283_s1 + $0x8] sm:$0xff] (!%p142_p9)  ;;  %v192_v1 = vld [vmem:[%s4283_s1 + $0x20] sm:$0xff] (!%p142_p9)  ;;  %s3134_s30 = sshll.u32 (!%p142_p9), %s3699_s16, 4  ;;  %v191_v4 = vld [vmem:[%s4283_s1 + $0x18] sm:$0xff] (!%p142_p9)  ;;  %v3653_v7 = vmov (!%p142_p9), 0.0   ;;  %vm217_vm0 = vcmask (!%p142_p9), 261120   ;;  %v202_v35 = vlaneseq (!%p142_p9) }
   0xe   : > { %145 = sbr.rel (%p142_p9) target bundleno = 1056 (0x420), region = 32  ;;  %v188_v2 = vld [vmem:[%s4283_s1] sm:$0xff] (!%p142_p9)  ;;  %v3466_v3 = vpack.c.bf16 (!%p142_p9), %v192_v1, %v189_v0  ;;  %v195_v5 = vld [vmem:[%s4283_s1 + $0x38] sm:$0xff] (!%p142_p9)  ;;  %v198_v6 = vld [vmem:[%s4283_s1 + $0x50] sm:$0xff] (!%p142_p9)  ;;  %330 = vmatprep.mubr.f32.mxu0 (!%p142_p9), %v3653_v7  ;;  %p166_p10 = scmp.lt.s32.totalorder (!%p142_p9), %s3134_s30, 31  ;;  %vm3654_vm1 = vmmov (!%p142_p9), 0  }
   0xf   : > { %v3468_v8 = vpack.c.bf16 (!%p142_p9), %v191_v4, %v188_v2  ;;  %v3470_v9 = vpack.c.bf16 (!%p142_p9), %v198_v6, %v195_v5  ;;  %v194_v10 = vld [vmem:[%s4283_s1 + $0x30] sm:$0xff] (!%p142_p9)  ;;  %v197_v11 = vld [vmem:[%s4283_s1 + $0x48] sm:$0xff] (!%p142_p9)  ;;  %v196_v14 = vld [vmem:[%s4283_s1 + $0x40] sm:$0xff] (!%p142_p9)  ;;  %v203_v36 = vshrl.u32 (!%p142_p9), %v202_v35, 7  ;;  %vm1692_vm2 = vcmask (!%p142_p9), 64512   ;;  %s162_s10 = sand.u32 (!%p142_p9), 1, %s3643_s13  }
  0x10   : > { %v190_v12 = vld [vmem:[%s4283_s1 + $0x10] sm:$0xff] (!%p142_p9)  ;;  %3467 = vmatprep.subr.bf16.mxu0 (!%p142_p9), %v3466_v3  ;;  %v193_v13 = vld [vmem:[%s4283_s1 + $0x28] sm:$0xff] (!%p142_p9)  ;;  %v199_v15 = vld [vmem:[%s4283_s1 + $0x58] sm:$0xff] (!%p142_p9)  ;;  %v3472_v16 = vpack.c.bf16 (!%p142_p9), %v197_v11, %v194_v10  ;;  %s3133_s11 = sshll.u32 (!%p142_p9), %s162_s10, 7  ;;  %s3189_s19 = sshll.u32 (!%p142_p9), %s3699_s16, 11 }
  0x11   : > { %3469 = vmatpush1.bf16.msra.mxu0 (!%p142_p9), %v3468_v8  ;;  %v3474_v17 = vpack.c.bf16 (!%p142_p9), %v193_v13, %v190_v12  ;;  %v3478_v18 = vpack.c.bf16 (!%p142_p9), %v199_v15, %v196_v14  ;;  %v208_v37 = vsub.s32 (!%p142_p9), 1, %v203_v36  ;;  %v200_v38 = vld [vmem:[%s4284_s2] sm:$0x7] (!%p142_p9)  ;;  %v204_v39 = vsub.s32 (!%p142_p9), 0, %v203_v36  ;;  %s4212_s17 = scalar_lea.vmem (!%p142_p9), [#allocation2], %s3133_s11  ;;  %s4234_s26 = scalar_lea.hbm (!%p142_p9), %s4285_s3, %s3189_s19 }
  0x12   : > { %3471 = vmatprep.subr.bf16.mxu0 (!%p142_p9), %v3470_v9  ;;  %v212_v45 = vsub.s32 (!%p142_p9), 2, %v203_v36  ;;  %s3067_s20 = sshll.u32 (!%p142_p9), %s4212_s17, 4  ;;  %s4241_s27 = scalar_lea.sflag (!%p142_p9), [#allocation3], %s162_s10  ;;  %s4236_s20 = int_to_ptr.vmem [resolvable:$true] %s3067_s20 }
  0x13   : > { %3475 = vmatprep.subr.bf16.mxu1 (!%p142_p9), %v3474_v17  ;;  %v3841_v40 = vrot.slane (!%p142_p9), %v200_v38, %v208_v37  ;;  %v3843_v42 = vrot.slane (!%p142_p9), %v200_v38, %v204_v39  ;;  %s3589_s16 = scalar_lea.vmem (!%p142_p9), %s4236_s20, 2048  ;;  %s3655_s28 = smov (!%p142_p9), [#allocation2]  }
  0x14   : > { %3477 = vmatpush3.bf16.msra.mxu1 (!%p142_p9), %v3474_v17  ;;  %v3853_v52 = vrot.slane (!%p142_p9), %v200_v38, %v212_v45  ;;  %p3590_p11 = scmp.ne.s32.totalorder (!%p142_p9), %s4236_s20, %s3589_s16  ;;  %s3593_s29 = sshll.u32 (!%p142_p9), %s3655_s28, 4  ;;  %s3594_s29 = int_to_ptr.vmem [resolvable:$false] %s3593_s29 }
  0x15   : > { %s4293_s30 = smov (!%p166_p10, %s3134_s30), 31  ;;  %3473 = vmatpush1.bf16.msra.mxu0 %v3472_v16  ;;  %3479 = vmatprep.subr.bf16.mxu1 %v3478_v18  ;;  %s3595_s4 = scalar_lea.vmem %s3594_s29, 4096 }
  0x16   : > { %s3135_s5 = sshll.u32 %s4293_s30, 3  ;;  %3346 = vmatprep.subr.mxu0 %v3653_v7  ;;  %p3591_p12 = pnand %p3590_p11, %p3716_p5 }
  0x17   : > { %s3767_s8 = scalar_lea.vmem %s4282_s0, %s3135_s5  ;;  %p3596_p0 = scmp.lt.s32.totalorder %s4236_s20, %s3594_s29 }
  0x18   : > { %v172_v19 = vld [vmem:[%s3767_s8] sm:$0xff]  ;;  %3481 = vmatpush3.bf16.msra.mxu1 %v3478_v18  ;;  %v173_v20 = vld [vmem:[%s3767_s8 + $0x8] sm:$0xff]  ;;  %v174_v21 = vld [vmem:[%s3767_s8 + $0x10] sm:$0xff]  ;;  %p3592_p13 = pneg %p3591_p12  ;;  %p3597_p1 = scmp.lt.s32.totalorder %s3595_s4, %s3589_s16 }
  0x19   : > { %3282 = vmatprep.mubr.msk.f32.mxu1 %vm217_vm0, %v172_v19  ;;  %3136 = vmatmul.mubr.msk.f32.vlgmr.msra.gmra.mrb[0].mxu0 %vm217_vm0, %v172_v19  ;;  %v175_v22 = vld [vmem:[%s3767_s8 + $0x18] sm:$0xff]  ;;  %v176_v23 = vld [vmem:[%s3767_s8 + $0x20] sm:$0xff]  ;;  %v177_v24 = vld [vmem:[%s3767_s8 + $0x28] sm:$0xff] }
  0x1a   : > { %336 = vmatprep.mubr.f32.mxu0 %v3653_v7  ;;  %3306 = vmatprep.subr.mxu1 %v3653_v7  ;;  %v178_v25 = vld [vmem:[%s3767_s8 + $0x30] sm:$0xff]  ;;  %v179_v26 = vld [vmem:[%s3767_s8 + $0x38] sm:$0xff]  ;;  %v180_v27 = vld [vmem:[%s3767_s8 + $0x40] sm:$0xff]  ;;  %p3598_p2 = por %p3597_p1, %p3596_p0 }
  0x1b   : > { %3283 = vmatmul.mubr.msk.f32.vlgmr.msra.gmra.mrb[0].mxu1 %vm217_vm0, %v173_v20  ;;  %v181_v28 = vld [vmem:[%s3767_s8 + $0x48] sm:$0xff]  ;;  %v182_v29 = vld [vmem:[%s3767_s8 + $0x50] sm:$0xff]  ;;  %v183_v30 = vld [vmem:[%s3767_s8 + $0x58] sm:$0xff] }
  0x1c   : > { %3285 = vmatprep.mubr.msk.f32.mxu1 %vm217_vm0, %v174_v21  ;;  %v184_v31 = vld [vmem:[%s3767_s8 + $0x60] sm:$0xff]  ;;  %v185_v32 = vld [vmem:[%s3767_s8 + $0x68] sm:$0xff]  ;;  %v186_v33 = vld [vmem:[%s3767_s8 + $0x70] sm:$0xff]  ;;  %p3599_p3 = pnand %p3598_p2, %p3592_p13 }
  0x1d   : > { %3137 = vmatmul.mubr.msk.f32.gmra.mrb[2].mxu0 %vm217_vm0, %v173_v20  ;;  %v187_v34 = vld [vmem:[%s3767_s8 + $0x78] sm:$0xff] }
  0x1e   : > { %342 = vmatprep.mubr.f32.mxu0 %v3653_v7 }
  0x1f   : > { %3286 = vmatmul.mubr.msk.f32.gmra.mrb[2].mxu1 %vm217_vm0, %v175_v22 }
  0x20   : > { %3288 = vmatprep.mubr.msk.f32.mxu1 %vm217_vm0, %v176_v23 }
  0x21   : > { %3138 = vmatmul.mubr.msk.f32.gmra.mrb[4].mxu0 %vm217_vm0, %v174_v21 }
  0x22   : > { %348 = vmatprep.mubr.f32.mxu0 %v3653_v7 }
  0x23   : > { %3289 = vmatmul.mubr.msk.f32.gmra.mrb[4].mxu1 %vm217_vm0, %v177_v24 }
  0x24   : > { %3291 = vmatprep.mubr.msk.f32.mxu1 %vm217_vm0, %v178_v25 }
  0x25   : > { %3139 = vmatmul.mubr.msk.f32.gmra.mrb[6].mxu0 %vm217_vm0, %v175_v22 }
  0x26   : > { %354 = vmatprep.mubr.f32.mxu0 %v3653_v7 }
  0x27   : > { %3292 = vmatmul.mubr.msk.f32.gmra.mrb[6].mxu1 %vm217_vm0, %v179_v26 }
  0x28   : > { %3294 = vmatprep.mubr.msk.f32.mxu1 %vm217_vm0, %v180_v27 }
  0x29   : > { %3140 = vmatmul.mubr.msk.f32.gmra.mrb[8].mxu0 %vm217_vm0, %v176_v23 }
  0x2a   : > { %360 = vmatprep.mubr.f32.mxu0 %v3653_v7 }
  0x2b   : > { %3295 = vmatmul.mubr.msk.f32.gmra.mrb[8].mxu1 %vm217_vm0, %v181_v28 }
  0x2c   : > { %3297 = vmatprep.mubr.msk.f32.mxu1 %vm217_vm0, %v182_v29 }
  0x2d   : > { %3141 = vmatmul.mubr.msk.f32.gmra.mrb[10].mxu0 %vm217_vm0, %v177_v24 }
  0x2e   : > { %366 = vmatprep.mubr.f32.mxu0 %v3653_v7 }
  0x2f   : > { %3298 = vmatmul.mubr.msk.f32.gmra.mrb[10].mxu1 %vm217_vm0, %v183_v30 }
  0x30   : > { %3300 = vmatprep.mubr.msk.f32.mxu1 %vm217_vm0, %v184_v31 }
  0x31   : > { %3142 = vmatmul.mubr.msk.f32.gmra.mrb[12].mxu0 %vm217_vm0, %v178_v25 }
  0x32   : > { %372 = vmatprep.mubr.f32.mxu0 %v3653_v7 }
  0x33   : > { %3301 = vmatmul.mubr.msk.f32.gmra.mrb[12].mxu1 %vm217_vm0, %v185_v32 }
  0x34   : > { %3303 = vmatprep.mubr.msk.f32.mxu1 %vm217_vm0, %v186_v33 }
  0x35   : > { %3143 = vmatmul.mubr.msk.f32.gmra.mrb[14].mxu0 %vm217_vm0, %v179_v26 }
  0x36   : > { %378 = vmatprep.mubr.f32.mxu0 %v3653_v7 }
  0x37   : > { %3304 = vmatmul.mubr.msk.f32.gmra.mrb[14].mxu1 %vm217_vm0, %v187_v34 }
  0x38   : > { %3308 = vmatprep.mubr.msk.f32.mxu1 %vm3654_vm1, %v3653_v7 }
  0x39   : > { %3144 = vmatmul.mubr.msk.f32.gmra.mrb[16].mxu0 %vm217_vm0, %v180_v27 }
  0x3a   : > { %384 = vmatprep.mubr.f32.mxu0 %v3653_v7 }
  0x3d   : > { %3145 = vmatmul.mubr.msk.f32.gmra.mrb[18].mxu0 %vm217_vm0, %v181_v28 }
  0x3e   : > { %390 = vmatprep.mubr.f32.mxu0 %v3653_v7 }
  0x41   : > { %3146 = vmatmul.mubr.msk.f32.gmra.mrb[20].mxu0 %vm217_vm0, %v182_v29 }
  0x42   : > { %396 = vmatprep.mubr.f32.mxu0 %v3653_v7 }
  0x45   : > { %3147 = vmatmul.mubr.msk.f32.gmra.mrb[22].mxu0 %vm217_vm0, %v183_v30 }
  0x46   : > { %402 = vmatprep.mubr.f32.mxu0 %v3653_v7 }
  0x49   : > { %3148 = vmatmul.mubr.msk.f32.gmra.mrb[24].mxu0 %vm217_vm0, %v184_v31 }
  0x4a   : > { %408 = vmatprep.mubr.f32.mxu0 %v3653_v7 }
  0x4d   : > { %3149 = vmatmul.mubr.msk.f32.gmra.mrb[26].mxu0 %vm217_vm0, %v185_v32 }
  0x4e   : > { %414 = vmatprep.mubr.f32.mxu0 %v3653_v7 }
  0x51   : > { %3150 = vmatmul.mubr.msk.f32.gmra.mrb[28].mxu0 %vm217_vm0, %v186_v33 }
  0x52   : > { %420 = vmatprep.mubr.f32.mxu0 %v3653_v7 }
  0x55   : > { %3151 = vmatmul.mubr.msk.f32.gmra.mrb[30].mxu0 %vm217_vm0, %v187_v34 }
  0x56   : > { %3348 = vmatprep.mubr.msk.f32.mxu0 %vm3654_vm1, %v3653_v7 }
  0xec   : > { %v332_v41 = vpop.f32.mrb[0].mxu0 }
  0xed   : > { %v334_v43 = vpop.f32.mrb[1].mxu0  ;;  %v333_v49 = vadd.f32 %v332_v41, %v3843_v42 }
  0xee   : > { %v335_v44 = vadd.f32 %v334_v43, %v3841_v40  ;;  %v3846_v46 = vpop.f32.mrb[0].mxu1 }
  0xef   : > { %v3848_v48 = vpop.f32.mrb[1].mxu1 }
  0xf0   : > { %v338_v47 = vpop.f32.mrb[2].mxu0  ;;  %3307 = vmatpush3.xpose.msra.mxu1 %v335_v44 }
  0xf1   : > { %v340_v50 = vpop.f32.mrb[3].mxu0  ;;  %3311 = vmatprep.subr.mxu1 %v3653_v7  ;;  %v339_v57 = vadd.f32 %v338_v47, %v3843_v42 }
  0xf2   : > { %v341_v51 = vadd.f32 %v340_v50, %v3841_v40  ;;  %v3287_v53 = vpop.f32.mrb[2].mxu1 }
  0xf3   : > { %3309 = vmatmul.mubr.f32.vlgmr.msra.gmra.mrb[16].mxu1 %v333_v49  ;;  %v3858_v55 = vadd.f32 %v3287_v53, %v3853_v52  ;;  %v503_v56 = vpop.f32.mrb[3].mxu1 }
  0xf4   : > { %v344_v54 = vpop.f32.mrb[4].mxu0  ;;  %3312 = vmatpush3.xpose.msra.mxu1 %v341_v51  ;;  %3313 = vmatprep.mubr.msk.f32.mxu1 %vm3654_vm1, %v3653_v7  ;;  %v3863_v59 = vadd.f32 %v503_v56, %v3853_v52 }
  0xf5   : > { %v346_v58 = vpop.f32.mrb[5].mxu0  ;;  %3316 = vmatprep.subr.mxu1 %v3653_v7  ;;  %v345_v1 = vadd.f32 %v344_v54, %v3843_v42 }
  0xf6   : > { %v347_v60 = vadd.f32 %v346_v58, %v3841_v40  ;;  %v3290_v61 = vpop.f32.mrb[4].mxu1 }
  0xf7   : > { %3314 = vmatmul.mubr.f32.vlgmr.msra.gmra.mrb[18].mxu1 %v339_v57  ;;  %v3869_v63 = vadd.f32 %v3290_v61, %v3853_v52  ;;  %v513_v0 = vpop.f32.mrb[5].mxu1 }
  0xf8   : > { %v350_v62 = vpop.f32.mrb[6].mxu0  ;;  %3317 = vmatpush3.xpose.msra.mxu1 %v347_v60  ;;  %3318 = vmatprep.mubr.msk.f32.mxu1 %vm3654_vm1, %v3653_v7  ;;  %v3874_v3 = vadd.f32 %v513_v0, %v3853_v52 }
  0xf9   : > { %v352_v2 = vpop.f32.mrb[7].mxu0  ;;  %3321 = vmatprep.subr.mxu1 %v3653_v7  ;;  %v351_v10 = vadd.f32 %v350_v62, %v3843_v42 }
  0xfa   : > { %v353_v4 = vadd.f32 %v352_v2, %v3841_v40  ;;  %v3293_v5 = vpop.f32.mrb[6].mxu1 }
  0xfb   : > { %3319 = vmatmul.mubr.f32.vlgmr.msra.gmra.mrb[20].mxu1 %v345_v1  ;;  %v3880_v8 = vadd.f32 %v3293_v5, %v3853_v52  ;;  %v523_v9 = vpop.f32.mrb[7].mxu1 }
  0xfc   : > { %v356_v6 = vpop.f32.mrb[8].mxu0  ;;  %3322 = vmatpush3.xpose.msra.mxu1 %v353_v4  ;;  %3323 = vmatprep.mubr.msk.f32.mxu1 %vm3654_vm1, %v3653_v7  ;;  %v3885_v12 = vadd.f32 %v523_v9, %v3853_v52 }
  0xfd   : > { %v358_v11 = vpop.f32.mrb[9].mxu0  ;;  %3326 = vmatprep.subr.mxu1 %v3653_v7  ;;  %v357_v18 = vadd.f32 %v356_v6, %v3843_v42 }
  0xfe   : > { %v359_v13 = vadd.f32 %v358_v11, %v3841_v40  ;;  %v3296_v14 = vpop.f32.mrb[8].mxu1 }
  0xff   : > { %3324 = vmatmul.mubr.f32.vlgmr.msra.gmra.mrb[22].mxu1 %v351_v10  ;;  %v3891_v16 = vadd.f32 %v3296_v14, %v3853_v52  ;;  %v533_v17 = vpop.f32.mrb[9].mxu1 }
 0x100   : > { %v362_v15 = vpop.f32.mrb[10].mxu0  ;;  %3327 = vmatpush3.xpose.msra.mxu1 %v359_v13  ;;  %3328 = vmatprep.mubr.msk.f32.mxu1 %vm3654_vm1, %v3653_v7  ;;  %v3896_v20 = vadd.f32 %v533_v17, %v3853_v52 }
 0x101   : > { %v364_v19 = vpop.f32.mrb[11].mxu0  ;;  %3331 = vmatprep.subr.mxu1 %v3653_v7  ;;  %v363_v26 = vadd.f32 %v362_v15, %v3843_v42 }
 0x102   : > { %v365_v21 = vadd.f32 %v364_v19, %v3841_v40  ;;  %v3299_v22 = vpop.f32.mrb[10].mxu1 }
 0x103   : > { %3329 = vmatmul.mubr.f32.vlgmr.msra.gmra.mrb[24].mxu1 %v357_v18  ;;  %v3902_v24 = vadd.f32 %v3299_v22, %v3853_v52  ;;  %v543_v25 = vpop.f32.mrb[11].mxu1 }
 0x104   : > { %v368_v23 = vpop.f32.mrb[12].mxu0  ;;  %3332 = vmatpush3.xpose.msra.mxu1 %v365_v21  ;;  %3333 = vmatprep.mubr.msk.f32.mxu1 %vm3654_vm1, %v3653_v7  ;;  %v3907_v28 = vadd.f32 %v543_v25, %v3853_v52  ;;  %v494_v21 = vadd.f32 %v3848_v48, %v3853_v52 }
 0x105   : > { %v370_v27 = vpop.f32.mrb[13].mxu0  ;;  %3336 = vmatprep.subr.mxu1 %v3653_v7  ;;  %v369_v34 = vadd.f32 %v368_v23, %v3843_v42 }
 0x106   : > { %v371_v29 = vadd.f32 %v370_v27, %v3841_v40  ;;  %v3302_v30 = vpop.f32.mrb[12].mxu1 }
 0x107   : > { %3334 = vmatmul.mubr.f32.vlgmr.msra.gmra.mrb[26].mxu1 %v363_v26  ;;  %v3913_v32 = vadd.f32 %v3302_v30, %v3853_v52  ;;  %v553_v33 = vpop.f32.mrb[13].mxu1  ;;  %v499_v26 = vadd.f32 %v3846_v46, %v3853_v52 }
 0x108   : > { %v374_v31 = vpop.f32.mrb[14].mxu0  ;;  %3337 = vmatpush3.xpose.msra.mxu1 %v371_v29  ;;  %3338 = vmatprep.mubr.msk.f32.mxu1 %vm3654_vm1, %v3653_v7  ;;  %v3918_v36 = vadd.f32 %v553_v33, %v3853_v52 }
 0x109   : > { %v376_v35 = vpop.f32.mrb[15].mxu0  ;;  %3341 = vmatprep.subr.mxu1 %v3653_v7  ;;  %v375_v44 = vadd.f32 %v374_v31, %v3843_v42 }
 0x10a   : > { %v377_v37 = vadd.f32 %v376_v35, %v3841_v40  ;;  %v3305_v38 = vpop.f32.mrb[14].mxu1 }
 0x10b   : > { %3339 = vmatmul.mubr.f32.vlgmr.msra.gmra.mrb[28].mxu1 %v369_v34  ;;  %v3924_v41 = vadd.f32 %v3305_v38, %v3853_v52  ;;  %v563_v43 = vpop.f32.mrb[15].mxu1 }
 0x10c   : > { %v380_v39 = vpop.f32.mrb[16].mxu0  ;;  %3342 = vmatpush3.xpose.msra.mxu1 %v377_v37  ;;  %3343 = vmatprep.mubr.msk.f32.mxu1 %vm3654_vm1, %v3653_v7  ;;  %v3929_v47 = vadd.f32 %v563_v43, %v3853_v52 }
 0x10d   : > { %v382_v45 = vpop.f32.mrb[17].mxu0  ;;  %3351 = vmatprep.subr.mxu1 %v3653_v7  ;;  %v381_v51 = vadd.f32 %v380_v39, %v3843_v42 }
 0x10e   : > { %v383_v49 = vadd.f32 %v382_v45, %v3841_v40 }
 0x10f   : > { %3344 = vmatmul.mubr.f32.vlgmr.msra.gmra.mrb[30].mxu1 %v375_v44 }
 0x110   : > { %v386_v50 = vpop.f32.mrb[18].mxu0  ;;  %3347 = vmatpush3.xpose.msra.mxu0 %v383_v49  ;;  %3353 = vmatprep.mubr.msk.f32.mxu1 %vm3654_vm1, %v3653_v7 }
 0x111   : > { %v388_v53 = vpop.f32.mrb[19].mxu0  ;;  %3356 = vmatprep.subr.mxu0 %v3653_v7  ;;  %v387_v57 = vadd.f32 %v386_v50, %v3843_v42 }
 0x112   : > { %v389_v54 = vadd.f32 %v388_v53, %v3841_v40 }
 0x113   : > { %3349 = vmatmul.mubr.f32.vlgmr.msra.gmra.mrb[32].mxu0 %v381_v51 }
 0x114   : > { %v392_v56 = vpop.f32.mrb[20].mxu0  ;;  %3352 = vmatpush3.xpose.msra.mxu1 %v389_v54  ;;  %3358 = vmatprep.mubr.msk.f32.mxu0 %vm3654_vm1, %v3653_v7 }
 0x115   : > { %v394_v58 = vpop.f32.mrb[21].mxu0  ;;  %3361 = vmatprep.subr.mxu1 %v3653_v7  ;;  %v393_v62 = vadd.f32 %v392_v56, %v3843_v42 }
 0x116   : > { %v395_v60 = vadd.f32 %v394_v58, %v3841_v40 }
 0x117   : > { %3354 = vmatmul.mubr.f32.vlgmr.msra.gmra.mrb[32].mxu1 %v387_v57 }
 0x118   : > { %v398_v61 = vpop.f32.mrb[22].mxu0  ;;  %3357 = vmatpush3.xpose.msra.mxu0 %v395_v60  ;;  %3363 = vmatprep.mubr.msk.f32.mxu1 %vm3654_vm1, %v3653_v7 }
 0x119   : > { %v400_v0 = vpop.f32.mrb[23].mxu0  ;;  %3366 = vmatprep.subr.mxu0 %v3653_v7  ;;  %v399_v4 = vadd.f32 %v398_v61, %v3843_v42 }
 0x11a   : > { %v401_v1 = vadd.f32 %v400_v0, %v3841_v40 }
 0x11b   : > { %3359 = vmatmul.mubr.f32.vlgmr.msra.gmra.mrb[34].mxu0 %v393_v62 }
 0x11c   : > { %v404_v2 = vpop.f32.mrb[24].mxu0  ;;  %3362 = vmatpush3.xpose.msra.mxu1 %v401_v1  ;;  %3368 = vmatprep.mubr.msk.f32.mxu0 %vm3654_vm1, %v3653_v7 }
 0x11d   : > { %v406_v5 = vpop.f32.mrb[25].mxu0  ;;  %3371 = vmatprep.subr.mxu1 %v3653_v7  ;;  %v405_v10 = vadd.f32 %v404_v2, %v3843_v42 }
 0x11e   : > { %v407_v6 = vadd.f32 %v406_v5, %v3841_v40 }
 0x11f   : > { %3364 = vmatmul.mubr.f32.vlgmr.msra.gmra.mrb[34].mxu1 %v399_v4 }
 0x120   : > { %v410_v9 = vpop.f32.mrb[26].mxu0  ;;  %3367 = vmatpush3.xpose.msra.mxu0 %v407_v6  ;;  %3373 = vmatprep.mubr.msk.f32.mxu1 %vm3654_vm1, %v3653_v7 }
 0x121   : > { %v412_v11 = vpop.f32.mrb[27].mxu0  ;;  %3376 = vmatprep.subr.mxu0 %v3653_v7  ;;  %v411_v15 = vadd.f32 %v410_v9, %v3843_v42 }
 0x122   : > { %v413_v13 = vadd.f32 %v412_v11, %v3841_v40 }
 0x123   : > { %3369 = vmatmul.mubr.f32.vlgmr.msra.gmra.mrb[36].mxu0 %v405_v10 }
 0x124   : > { %v416_v14 = vpop.f32.mrb[28].mxu0  ;;  %3372 = vmatpush3.xpose.msra.mxu1 %v413_v13  ;;  %3378 = vmatprep.mubr.msk.f32.mxu0 %vm3654_vm1, %v3653_v7 }
 0x125   : > { %v418_v17 = vpop.f32.mrb[29].mxu0  ;;  %3381 = vmatprep.subr.mxu1 %v3653_v7  ;;  %v417_v22 = vadd.f32 %v416_v14, %v3843_v42 }
 0x126   : > { %v419_v18 = vadd.f32 %v418_v17, %v3841_v40 }
 0x127   : > { %3374 = vmatmul.mubr.f32.vlgmr.msra.gmra.mrb[36].mxu1 %v411_v15 }
 0x128   : > { %v422_v19 = vpop.f32.mrb[30].mxu0  ;;  %3377 = vmatpush3.xpose.msra.mxu0 %v419_v18  ;;  %3383 = vmatprep.mubr.msk.f32.mxu1 %vm3654_vm1, %v3653_v7 }
 0x129   : > { %v424_v23 = vpop.f32.mrb[31].mxu0  ;;  %3386 = vmatprep.subr.mxu0 %v3653_v7  ;;  %v423_v27 = vadd.f32 %v422_v19, %v3843_v42 }
 0x12a   : > { %v425_v25 = vadd.f32 %v424_v23, %v3841_v40 }
 0x12b   : > { %3379 = vmatmul.mubr.f32.vlgmr.msra.gmra.mrb[38].mxu0 %v417_v22 }
 0x12c   : > { %3382 = vmatpush3.xpose.msra.mxu1 %v425_v25  ;;  %3387 = vmatpush3.msra.mxu0 %v494_v21 }
 0x12d   : > { %3391 = vmatprep.subr.mxu1 %v3653_v7  ;;  %3388 = vmatprep.mubr.msk.f32.mxu0 %vm3654_vm1, %v3653_v7 }
 0x12e   : > { %3396 = vmatprep.subr.mxu0 %v3653_v7 }
 0x12f   : > { %3384 = vmatmul.mubr.f32.vlgmr.msra.gmra.mrb[38].mxu1 %v423_v27 }
 0x130   : > { %3392 = vmatpush3.msra.mxu1 %v499_v26  ;;  %3393 = vmatprep.mubr.msk.f32.mxu1 %vm3654_vm1, %v3653_v7 }
 0x131   : > { %3401 = vmatprep.subr.mxu1 %v3653_v7 }
 0x1c6   : > { %v3979_v40 = vpop.f32.mrb[16].mxu1 }
 0x1c7   : > { %v3310_v46 = vpop.f32.mrb[17].mxu1  ;;  %v1693_v42 = vsel %vm1692_vm2, %v3979_v40, -inf }
 0x1c8   : > { %1694 = vmax.xlane.f32.xlu0 %v1693_v42 }
 0x1ca   : > { %v3983_v48 = vpop.f32.mrb[18].mxu1 }
 0x1cb   : > { %v3315_v52 = vpop.f32.mrb[19].mxu1  ;;  %v1696_v29 = vsel %vm1692_vm2, %v3983_v48, -inf }
 0x1cc   : > { %1697 = vmax.xlane.f32.xlu0 %v1696_v29 }
 0x1ce   : > { %v3987_v30 = vpop.f32.mrb[20].mxu1 }
 0x1cf   : > { %v3320_v31 = vpop.f32.mrb[21].mxu1  ;;  %v1699_v33 = vsel %vm1692_vm2, %v3987_v30, -inf }
 0x1d0   : > { %1700 = vmax.xlane.f32.xlu1 %v1699_v33 }
 0x1d2   : > { %v3991_v34 = vpop.f32.mrb[22].mxu1 }
 0x1d3   : > { %v3325_v35 = vpop.f32.mrb[23].mxu1  ;;  %v1702_v37 = vsel %vm1692_vm2, %v3991_v34, -inf }
 0x1d4   : > { %1703 = vmax.xlane.f32.xlu1 %v1702_v37 }
 0x1d6   : > { %v3995_v38 = vpop.f32.mrb[24].mxu1 }
 0x1d7   : > { %v3330_v39 = vpop.f32.mrb[25].mxu1  ;;  %v1705_v43 = vsel %vm1692_vm2, %v3995_v38, -inf }
 0x1d8   : > { %1706 = vmax.xlane.f32.xlu0 %v1705_v43 }
 0x1da   : > { %v3999_v44 = vpop.f32.mrb[26].mxu1 }
 0x1db   : > { %v3335_v45 = vpop.f32.mrb[27].mxu1  ;;  %v1708_v49 = vsel %vm1692_vm2, %v3999_v44, -inf }
 0x1dc   : > { %1709 = vmax.xlane.f32.xlu1 %v1708_v49 }
 0x1de   : > { %v4003_v50 = vpop.f32.mrb[28].mxu1 }
 0x1df   : > { %v3340_v51 = vpop.f32.mrb[29].mxu1  ;;  %v1711_v53 = vsel %vm1692_vm2, %v4003_v50, -inf }
 0x1e0   : > { %1712 = vmax.xlane.f32.xlu0 %v1711_v53 }
 0x1e2   : > { %v4007_v54 = vpop.f32.mrb[30].mxu1 }
 0x1e3   : > { %v3345_v56 = vpop.f32.mrb[31].mxu1  ;;  %v1714_v57 = vsel %vm1692_vm2, %v4007_v54, -inf }
 0x1e4   : > { %1715 = vmax.xlane.f32.xlu1 %v1714_v57 }
 0x1e6   : > { %v4011_v58 = vpop.f32.mrb[32].mxu0 }
 0x1e7   : > { %v3350_v60 = vpop.f32.mrb[33].mxu0  ;;  %v1717_v61 = vsel %vm1692_vm2, %v4011_v58, -inf }
 0x1e8   : > { %1718 = vmax.xlane.f32.xlu0 %v1717_v61 }
 0x1ea   : > { %v4015_v62 = vpop.f32.mrb[32].mxu1 }
 0x1eb   : > { %v1720_v0 = vsel %vm1692_vm2, %v4015_v62, -inf  ;;  %v3355_v1 = vpop.f32.mrb[33].mxu1 }
 0x1ec   : > { %1721 = vmax.xlane.f32.xlu1 %v1720_v0 }
 0x1ee   : > { %v4019_v2 = vpop.f32.mrb[34].mxu0 }
 0x1ef   : > { %v1723_v4 = vsel %vm1692_vm2, %v4019_v2, -inf  ;;  %v3360_v5 = vpop.f32.mrb[35].mxu0 }
 0x1f0   : > { %1724 = vmax.xlane.f32.xlu0 %v1723_v4 }
 0x1f2   : > { %v4023_v6 = vpop.f32.mrb[34].mxu1 }
 0x1f3   : > { %v1726_v9 = vsel %vm1692_vm2, %v4023_v6, -inf  ;;  %v3365_v10 = vpop.f32.mrb[35].mxu1 }
 0x1f4   : > { %1727 = vmax.xlane.f32.xlu1 %v1726_v9 }
 0x1f6   : > { %v4027_v11 = vpop.f32.mrb[36].mxu0 }
 0x1f7   : > { %v1729_v13 = vsel %vm1692_vm2, %v4027_v11, -inf  ;;  %v3370_v14 = vpop.f32.mrb[37].mxu0 }
 0x1f8   : > { %1730 = vmax.xlane.f32.xlu0 %v1729_v13 }
 0x1fa   : > { %v4031_v15 = vpop.f32.mrb[36].mxu1 }
 0x1fb   : > { %v1732_v17 = vsel %vm1692_vm2, %v4031_v15, -inf  ;;  %v3375_v18 = vpop.f32.mrb[37].mxu1 }
 0x1fc   : > { %1733 = vmax.xlane.f32.xlu1 %v1732_v17 }
 0x1fe   : > { %v4035_v19 = vpop.f32.mrb[38].mxu0 }
 0x1ff   : > { %v1735_v21 = vsel %vm1692_vm2, %v4035_v19, -inf  ;;  %v3380_v22 = vpop.f32.mrb[39].mxu0 }
 0x200   : > { %1736 = vmax.xlane.f32.xlu0 %v1735_v21 }
 0x202   : > { %v4039_v23 = vpop.f32.mrb[38].mxu1 }
 0x203   : > { %v1738_v25 = vsel %vm1692_vm2, %v4039_v23, -inf  ;;  %v3385_v26 = vpop.f32.mrb[39].mxu1 }
 0x204   : > { %1739 = vmax.xlane.f32.xlu1 %v1738_v25 }
 0x255   : > { %v1695_v27 = vpop.xlane.xlu0 %1694 }
 0x256   : > { %v1741_v46 = vsub.f32 %v3979_v40, %v1695_v27 }
 0x258   : > { %v1757_v42 = vmul.f32 1.442695, %v1741_v46 }
 0x259   : > { %v1698_v52 = vpop.xlane.xlu0 %1697 }
 0x25a   : > { %3525 = vpow2.f32 %v1757_v42  ;;  %v1742_v29 = vsub.f32 %v3983_v48, %v1698_v52 }
 0x25c   : > { %v1759_v31 = vmul.f32 1.442695, %v1742_v29 }
 0x25d   : > { %v1701_v33 = vpop.xlane.xlu1 %1700 }
 0x25e   : > { %3527 = vpow2.f32 %v1759_v31  ;;  %v1743_v35 = vsub.f32 %v3987_v30, %v1701_v33 }
 0x260   : > { %v1761_v37 = vmul.f32 1.442695, %v1743_v35 }
 0x261   : > { %v1704_v39 = vpop.xlane.xlu1 %1703 }
 0x262   : > { %3529 = vpow2.f32 %v1761_v37  ;;  %v1744_v43 = vsub.f32 %v3991_v34, %v1704_v39 }
 0x264   : > { %v4047_v45 = vpop.eup %3525  ;;  %v1763_v49 = vmul.f32 1.442695, %v1744_v43 }
 0x265   : > { %v1707_v51 = vpop.xlane.xlu0 %1706  ;;  %v1789_v40 = vsel %vm1692_vm2, %v4047_v45, 0.0 }
 0x266   : > { %3531 = vpow2.f32 %v1763_v49  ;;  %v1745_v48 = vsub.f32 %v3995_v38, %v1707_v51  ;;  %1790 = vadd.xlane.f32.xlu0 %v1789_v40 }
 0x268   : > { %v4052_v53 = vpop.eup %3527  ;;  %v1765_v56 = vmul.f32 1.442695, %v1745_v48 }
 0x269   : > { %v1710_v30 = vpop.xlane.xlu1 %1709  ;;  %v1792_v57 = vsel %vm1692_vm2, %v4052_v53, 0.0 }
 0x26a   : > { %3533 = vpow2.f32 %v1765_v56  ;;  %v1746_v34 = vsub.f32 %v3999_v44, %v1710_v30  ;;  %1793 = vadd.xlane.f32.xlu1 %v1792_v57 }
 0x26c   : > { %v4057_v60 = vpop.eup %3529  ;;  %v1767_v61 = vmul.f32 1.442695, %v1746_v34 }
 0x26d   : > { %v1713_v0 = vpop.xlane.xlu0 %1712  ;;  %v1795_v1 = vsel %vm1692_vm2, %v4057_v60, 0.0 }
 0x26e   : > { %3535 = vpow2.f32 %v1767_v61  ;;  %v1747_v38 = vsub.f32 %v4003_v50, %v1713_v0  ;;  %1796 = vadd.xlane.f32.xlu0 %v1795_v1 }
 0x270   : > { %v4062_v4 = vpop.eup %3531  ;;  %v1769_v5 = vmul.f32 1.442695, %v1747_v38 }
 0x271   : > { %v1716_v9 = vpop.xlane.xlu1 %1715  ;;  %v1798_v10 = vsel %vm1692_vm2, %v4062_v4, 0.0 }
 0x272   : > { %3537 = vpow2.f32 %v1769_v5  ;;  %v1748_v44 = vsub.f32 %v4007_v54, %v1716_v9  ;;  %1799 = vadd.xlane.f32.xlu1 %v1798_v10 }
 0x274   : > { %v4067_v13 = vpop.eup %3533  ;;  %v1771_v14 = vmul.f32 1.442695, %v1748_v44 }
 0x275   : > { %v1719_v17 = vpop.xlane.xlu0 %1718  ;;  %v1801_v18 = vsel %vm1692_vm2, %v4067_v13, 0.0 }
 0x276   : > { %3539 = vpow2.f32 %v1771_v14  ;;  %v1749_v50 = vsub.f32 %v4011_v58, %v1719_v17  ;;  %1802 = vadd.xlane.f32.xlu0 %v1801_v18 }
 0x278   : > { %v4072_v21 = vpop.eup %3535  ;;  %v1773_v22 = vmul.f32 1.442695, %v1749_v50 }
 0x279   : > { %v1722_v25 = vpop.xlane.xlu1 %1721  ;;  %v1804_v26 = vsel %vm1692_vm2, %v4072_v21, 0.0 }
 0x27a   : > { %3541 = vpow2.f32 %v1773_v22  ;;  %v1750_v54 = vsub.f32 %v4015_v62, %v1722_v25  ;;  %1805 = vadd.xlane.f32.xlu1 %v1804_v26 }
 0x27c   : > { %v4077_v27 = vpop.eup %3537  ;;  %v1775_v46 = vmul.f32 1.442695, %v1750_v54 }
 0x27d   : > { %v1725_v42 = vpop.xlane.xlu0 %1724  ;;  %v1807_v52 = vsel %vm1692_vm2, %v4077_v27, 0.0 }
 0x27e   : > { %3543 = vpow2.f32 %v1775_v46  ;;  %v1751_v58 = vsub.f32 %v4019_v2, %v1725_v42  ;;  %1808 = vadd.xlane.f32.xlu0 %v1807_v52 }
 0x280   : > { %v4082_v29 = vpop.eup %3539  ;;  %v1777_v31 = vmul.f32 1.442695, %v1751_v58 }
 0x281   : > { %v1728_v33 = vpop.xlane.xlu1 %1727  ;;  %v1810_v35 = vsel %vm1692_vm2, %v4082_v29, 0.0 }
 0x282   : > { %3545 = vpow2.f32 %v1777_v31  ;;  %v1752_v62 = vsub.f32 %v4023_v6, %v1728_v33  ;;  %1811 = vadd.xlane.f32.xlu1 %v1810_v35 }
 0x284   : > { %v4087_v37 = vpop.eup %3541  ;;  %v1779_v39 = vmul.f32 1.442695, %v1752_v62 }
 0x285   : > { %v1731_v43 = vpop.xlane.xlu0 %1730  ;;  %v1813_v49 = vsel %vm1692_vm2, %v4087_v37, 0.0 }
 0x286   : > { %3547 = vpow2.f32 %v1779_v39  ;;  %v1753_v2 = vsub.f32 %v4027_v11, %v1731_v43  ;;  %1814 = vadd.xlane.f32.xlu0 %v1813_v49 }
 0x288   : > { %v4092_v51 = vpop.eup %3543  ;;  %v1781_v40 = vmul.f32 1.442695, %v1753_v2 }
 0x289   : > { %v1734_v48 = vpop.xlane.xlu1 %1733  ;;  %v1816_v56 = vsel %vm1692_vm2, %v4092_v51, 0.0 }
 0x28a   : > { %3549 = vpow2.f32 %v1781_v40  ;;  %v1754_v6 = vsub.f32 %v4031_v15, %v1734_v48  ;;  %1817 = vadd.xlane.f32.xlu1 %v1816_v56 }
 0x28c   : > { %v4097_v30 = vpop.eup %3545  ;;  %v1783_v57 = vmul.f32 1.442695, %v1754_v6 }
 0x28d   : > { %v1737_v34 = vpop.xlane.xlu0 %1736  ;;  %v1819_v61 = vsel %vm1692_vm2, %v4097_v30, 0.0 }
 0x28e   : > { %3551 = vpow2.f32 %v1783_v57  ;;  %v1755_v11 = vsub.f32 %v4035_v19, %v1737_v34  ;;  %1820 = vadd.xlane.f32.xlu0 %v1819_v61 }
 0x290   : > { %v4102_v0 = vpop.eup %3547  ;;  %v1785_v1 = vmul.f32 1.442695, %v1755_v11 }
 0x291   : > { %v1740_v38 = vpop.xlane.xlu1 %1739  ;;  %v1822_v5 = vsel %vm1692_vm2, %v4102_v0, 0.0 }
 0x292   : > { %3553 = vpow2.f32 %v1785_v1  ;;  %v1756_v15 = vsub.f32 %v4039_v23, %v1740_v38  ;;  %1823 = vadd.xlane.f32.xlu1 %v1822_v5 }
 0x294   : > { %v4107_v9 = vpop.eup %3549  ;;  %v1787_v10 = vmul.f32 1.442695, %v1756_v15 }
 0x295   : > { %v1825_v44 = vsel %vm1692_vm2, %v4107_v9, 0.0 }
 0x296   : > { %3555 = vpow2.f32 %v1787_v10  ;;  %1826 = vadd.xlane.f32.xlu0 %v1825_v44 }
 0x298   : > { %v4111_v19 = vpop.eup %3551 }
 0x299   : > { %v1828_v14 = vsel %vm1692_vm2, %v4111_v19, 0.0 }
 0x29a   : > { %1829 = vadd.xlane.f32.xlu1 %v1828_v14 }
 0x29c   : > { %v4115_v17 = vpop.eup %3553 }
 0x29d   : > { %v1831_v23 = vsel %vm1692_vm2, %v4115_v17, 0.0 }
 0x29e   : > { %1832 = vadd.xlane.f32.xlu0 %v1831_v23 }
 0x2a0   : > { %v4119_v18 = vpop.eup %3555 }
 0x2a1   : > { %v1834_v50 = vsel %vm1692_vm2, %v4119_v18, 0.0 }
 0x2a2   : > { %1835 = vadd.xlane.f32.xlu1 %v1834_v50 }
 0x2f3   : > { %v1791_v22 = vpop.xlane.xlu0 %1790 }
 0x2f4   : > { %3557 = vrcp.f32 %v1791_v22 }
 0x2f7   : > { %v1794_v25 = vpop.xlane.xlu1 %1793 }
 0x2f8   : > { %3559 = vrcp.f32 %v1794_v25 }
 0x2fb   : > { %v1797_v26 = vpop.xlane.xlu0 %1796 }
 0x2fc   : > { %3561 = vrcp.f32 %v1797_v26 }
 0x2fe   : > { %v3558_v54 = vpop.eup %3557 }
 0x2ff   : > { %v1853_v46 = vmul.f32 %v3558_v54, %v4047_v45  ;;  %v1800_v42 = vpop.xlane.xlu1 %1799 }
 0x300   : > { %3563 = vrcp.f32 %v1800_v42 }
 0x301   : > { %3389 = vmatmul.mubr.msk.f32.vlgmr.msra.gmra.mrb[40].mxu0 %vm1692_vm2, %v1853_v46 }
 0x302   : > { %v3560_v52 = vpop.eup %3559  ;;  %3397 = vmatpush3.msra.mxu0 %v3863_v59  ;;  %3398 = vmatprep.mubr.msk.f32.mxu0 %vm3654_vm1, %v3653_v7 }
 0x303   : > { %v1854_v58 = vmul.f32 %v3560_v52, %v4052_v53  ;;  %v1803_v31 = vpop.xlane.xlu0 %1802  ;;  %3406 = vmatprep.subr.mxu0 %v3653_v7 }
 0x304   : > { %3565 = vrcp.f32 %v1803_v31 }
 0x305   : > { %3394 = vmatmul.mubr.msk.f32.vlgmr.msra.gmra.mrb[40].mxu1 %vm1692_vm2, %v1854_v58 }
 0x306   : > { %v3562_v33 = vpop.eup %3561  ;;  %3402 = vmatpush3.msra.mxu1 %v3858_v55  ;;  %3403 = vmatprep.mubr.msk.f32.mxu1 %vm3654_vm1, %v3653_v7 }
 0x307   : > { %v1855_v45 = vmul.f32 %v3562_v33, %v4057_v60  ;;  %v1806_v59 = vpop.xlane.xlu1 %1805  ;;  %3411 = vmatprep.subr.mxu1 %v3653_v7 }
 0x308   : > { %3567 = vrcp.f32 %v1806_v59 }
 0x309   : > { %3399 = vmatmul.mubr.msk.f32.vlgmr.msra.gmra.mrb[42].mxu0 %vm1692_vm2, %v1855_v45 }
 0x30a   : > { %v3564_v53 = vpop.eup %3563  ;;  %3407 = vmatpush3.msra.mxu0 %v3874_v3  ;;  %3408 = vmatprep.mubr.msk.f32.mxu0 %vm3654_vm1, %v3653_v7 }
 0x30b   : > { %v1856_v35 = vmul.f32 %v3564_v53, %v4062_v4  ;;  %v1809_v55 = vpop.xlane.xlu0 %1808  ;;  %3416 = vmatprep.subr.mxu0 %v3653_v7 }
 0x30c   : > { %3569 = vrcp.f32 %v1809_v55 }
 0x30d   : > { %3404 = vmatmul.mubr.msk.f32.vlgmr.msra.gmra.mrb[42].mxu1 %vm1692_vm2, %v1856_v35 }
 0x30e   : > { %v3566_v60 = vpop.eup %3565  ;;  %3412 = vmatpush3.msra.mxu1 %v3869_v63  ;;  %3413 = vmatprep.mubr.msk.f32.mxu1 %vm3654_vm1, %v3653_v7 }
 0x30f   : > { %v1857_v62 = vmul.f32 %v3566_v60, %v4067_v13  ;;  %v1812_v3 = vpop.xlane.xlu1 %1811  ;;  %3421 = vmatprep.subr.mxu1 %v3653_v7 }
 0x310   : > { %3571 = vrcp.f32 %v1812_v3 }
 0x311   : > { %3409 = vmatmul.mubr.msk.f32.vlgmr.msra.gmra.mrb[44].mxu0 %vm1692_vm2, %v1857_v62 }
 0x312   : > { %v3568_v4 = vpop.eup %3567  ;;  %3417 = vmatpush3.msra.mxu0 %v3885_v12  ;;  %3418 = vmatprep.mubr.msk.f32.mxu0 %vm3654_vm1, %v3653_v7 }
 0x313   : > { %v1858_v39 = vmul.f32 %v3568_v4, %v4072_v21  ;;  %v1815_v63 = vpop.xlane.xlu0 %1814  ;;  %3426 = vmatprep.subr.mxu0 %v3653_v7 }
 0x314   : > { %3573 = vrcp.f32 %v1815_v63 }
 0x315   : > { %3414 = vmatmul.mubr.msk.f32.vlgmr.msra.gmra.mrb[44].mxu1 %vm1692_vm2, %v1858_v39 }
 0x316   : > { %v3570_v13 = vpop.eup %3569  ;;  %3422 = vmatpush3.msra.mxu1 %v3880_v8  ;;  %3423 = vmatprep.mubr.msk.f32.mxu1 %vm3654_vm1, %v3653_v7 }
 0x317   : > { %v1859_v43 = vmul.f32 %v3570_v13, %v4077_v27  ;;  %v1818_v12 = vpop.xlane.xlu1 %1817  ;;  %3431 = vmatprep.subr.mxu1 %v3653_v7 }
 0x318   : > { %3575 = vrcp.f32 %v1818_v12 }
 0x319   : > { %3419 = vmatmul.mubr.msk.f32.vlgmr.msra.gmra.mrb[46].mxu0 %vm1692_vm2, %v1859_v43 }
 0x31a   : > { %v3572_v21 = vpop.eup %3571  ;;  %3427 = vmatpush3.msra.mxu0 %v3896_v20  ;;  %3428 = vmatprep.mubr.msk.f32.mxu0 %vm3654_vm1, %v3653_v7 }
 0x31b   : > { %v1860_v49 = vmul.f32 %v3572_v21, %v4082_v29  ;;  %v1821_v8 = vpop.xlane.xlu0 %1820  ;;  %3436 = vmatprep.subr.mxu0 %v3653_v7 }
 0x31c   : > { %3577 = vrcp.f32 %v1821_v8 }
 0x31d   : > { %3424 = vmatmul.mubr.msk.f32.vlgmr.msra.gmra.mrb[46].mxu1 %vm1692_vm2, %v1860_v49 }
 0x31e   : > { %v3574_v27 = vpop.eup %3573  ;;  %3432 = vmatpush3.msra.mxu1 %v3891_v16  ;;  %3433 = vmatprep.mubr.msk.f32.mxu1 %vm3654_vm1, %v3653_v7 }
 0x31f   : > { %v1861_v2 = vmul.f32 %v3574_v27, %v4087_v37  ;;  %v1824_v20 = vpop.xlane.xlu1 %1823  ;;  %3441 = vmatprep.subr.mxu1 %v3653_v7 }
 0x320   : > { %3579 = vrcp.f32 %v1824_v20 }
 0x321   : > { %3429 = vmatmul.mubr.msk.f32.vlgmr.msra.gmra.mrb[48].mxu0 %vm1692_vm2, %v1861_v2 }
 0x322   : > { %v3576_v29 = vpop.eup %3575  ;;  %3437 = vmatpush3.msra.mxu0 %v3907_v28  ;;  %3438 = vmatprep.mubr.msk.f32.mxu0 %vm3654_vm1, %v3653_v7 }
 0x323   : > { %v1862_v40 = vmul.f32 %v3576_v29, %v4092_v51  ;;  %v1827_v16 = vpop.xlane.xlu0 %1826  ;;  %3446 = vmatprep.subr.mxu0 %v3653_v7 }
 0x324   : > { %3581 = vrcp.f32 %v1827_v16 }
 0x325   : > { %3434 = vmatmul.mubr.msk.f32.vlgmr.msra.gmra.mrb[48].mxu1 %vm1692_vm2, %v1862_v40 }
 0x326   : > { %v3578_v37 = vpop.eup %3577  ;;  %3442 = vmatpush3.msra.mxu1 %v3902_v24  ;;  %3443 = vmatprep.mubr.msk.f32.mxu1 %vm3654_vm1, %v3653_v7 }
 0x327   : > { %v1863_v48 = vmul.f32 %v3578_v37, %v4097_v30  ;;  %v1830_v28 = vpop.xlane.xlu1 %1829  ;;  %3451 = vmatprep.subr.mxu1 %v3653_v7 }
 0x328   : > { %3583 = vrcp.f32 %v1830_v28 }
 0x329   : > { %3439 = vmatmul.mubr.msk.f32.vlgmr.msra.gmra.mrb[50].mxu0 %vm1692_vm2, %v1863_v48 }
 0x32a   : > { %v3580_v51 = vpop.eup %3579  ;;  %3447 = vmatpush3.msra.mxu0 %v3918_v36  ;;  %3448 = vmatprep.mubr.msk.f32.mxu0 %vm3654_vm1, %v3653_v7 }
 0x32b   : > { %v1864_v56 = vmul.f32 %v3580_v51, %v4102_v0  ;;  %v1833_v24 = vpop.xlane.xlu0 %1832  ;;  %3456 = vmatprep.subr.mxu0 %v3653_v7 }
 0x32c   : > { %3585 = vrcp.f32 %v1833_v24 }
 0x32d   : > { %3444 = vmatmul.mubr.msk.f32.vlgmr.msra.gmra.mrb[50].mxu1 %vm1692_vm2, %v1864_v56 }
 0x32e   : > { %v3582_v6 = vpop.eup %3581  ;;  %3452 = vmatpush3.msra.mxu1 %v3913_v32  ;;  %3453 = vmatprep.mubr.msk.f32.mxu1 %vm3654_vm1, %v3653_v7 }
 0x32f   : > { %v1865_v30 = vmul.f32 %v3582_v6, %v4107_v9  ;;  %v1836_v36 = vpop.xlane.xlu1 %1835  ;;  %3461 = vmatprep.subr.mxu1 %v3653_v7 }
 0x330   : > { %3587 = vrcp.f32 %v1836_v36 }
 0x331   : > { %3449 = vmatmul.mubr.msk.f32.vlgmr.msra.gmra.mrb[52].mxu0 %vm1692_vm2, %v1865_v30 }
 0x332   : > { %v3584_v57 = vpop.eup %3583  ;;  %3457 = vmatpush3.msra.mxu0 %v3929_v47  ;;  %3458 = vmatprep.mubr.msk.f32.mxu0 %vm3654_vm1, %v3653_v7 }
 0x333   : > { %v1866_v32 = vmul.f32 %v3584_v57, %v4111_v19 }
 0x335   : > { %3454 = vmatmul.mubr.msk.f32.vlgmr.msra.gmra.mrb[52].mxu1 %vm1692_vm2, %v1866_v32 }
 0x336   : > { %v3586_v34 = vpop.eup %3585  ;;  %3462 = vmatpush3.msra.mxu1 %v3924_v41  ;;  %3463 = vmatprep.mubr.msk.f32.mxu1 %vm3654_vm1, %v3653_v7 }
 0x337   : > { %v1867_v61 = vmul.f32 %v3586_v34, %v4115_v17 }
 0x339   : > { %3459 = vmatmul.mubr.msk.f32.vlgmr.msra.gmra.mrb[54].mxu0 %vm1692_vm2, %v1867_v61 }
 0x33a   : > { %v3588_v11 = vpop.eup %3587 }
 0x33b   : > { %v1868_v47 = vmul.f32 %v3588_v11, %v4119_v18 }
 0x33d   : > { %3464 = vmatmul.mubr.msk.f32.vlgmr.msra.gmra.mrb[54].mxu1 %vm1692_vm2, %v1868_v47 }
 0x3d4   : > { %v1938_v0 = vpop.f32.mrb[40].mxu0 }
 0x3d5   : > { %3037 = vst [vmem:[%s4212_s17] sm:$0xff] %v1938_v0  ;;  %v3390_v7 = vpop.f32.mrb[41].mxu0 }
 0x3d8   : > { %v2011_v41 = vpop.f32.mrb[40].mxu1 }
 0x3d9   : > { %3038 = vst [vmem:[%s4212_s17 + $0x8] sm:$0xff] %v2011_v41  ;;  %v3395_v1 = vpop.f32.mrb[41].mxu1 }
 0x3dc   : > { %v2084_v38 = vpop.f32.mrb[42].mxu0 }
 0x3dd   : > { %3039 = vst [vmem:[%s4212_s17 + $0x10] sm:$0xff] %v2084_v38  ;;  %v3400_v5 = vpop.f32.mrb[43].mxu0 }
 0x3e0   : > { %v2157_v15 = vpop.f32.mrb[42].mxu1 }
 0x3e1   : > { %3040 = vst [vmem:[%s4212_s17 + $0x18] sm:$0xff] %v2157_v15  ;;  %v3405_v9 = vpop.f32.mrb[43].mxu1 }
 0x3e4   : > { %v2230_v10 = vpop.f32.mrb[44].mxu0 }
 0x3e5   : > { %3041 = vst [vmem:[%s4212_s17 + $0x20] sm:$0xff] %v2230_v10  ;;  %v3410_v44 = vpop.f32.mrb[45].mxu0 }
 0x3e8   : > { %v2303_v19 = vpop.f32.mrb[44].mxu1 }
 0x3e9   : > { %3042 = vst [vmem:[%s4212_s17 + $0x28] sm:$0xff] %v2303_v19  ;;  %v3415_v14 = vpop.f32.mrb[45].mxu1 }
 0x3ec   : > { %v2376_v17 = vpop.f32.mrb[46].mxu0 }
 0x3ed   : > { %3043 = vst [vmem:[%s4212_s17 + $0x30] sm:$0xff] %v2376_v17  ;;  %v3420_v23 = vpop.f32.mrb[47].mxu0 }
 0x3f0   : > { %v2449_v18 = vpop.f32.mrb[46].mxu1 }
 0x3f1   : > { %3044 = vst [vmem:[%s4212_s17 + $0x38] sm:$0xff] %v2449_v18  ;;  %v3425_v50 = vpop.f32.mrb[47].mxu1 }
 0x3f4   : > { %v2522_v22 = vpop.f32.mrb[48].mxu0 }
 0x3f5   : > { %3045 = vst [vmem:[%s4212_s17 + $0x40] sm:$0xff] %v2522_v22  ;;  %v3430_v25 = vpop.f32.mrb[49].mxu0 }
 0x3f8   : > { %v2595_v26 = vpop.f32.mrb[48].mxu1 }
 0x3f9   : > { %3046 = vst [vmem:[%s4212_s17 + $0x48] sm:$0xff] %v2595_v26  ;;  %v3435_v54 = vpop.f32.mrb[49].mxu1 }
 0x3fc   : > { %v2668_v46 = vpop.f32.mrb[50].mxu0 }
 0x3fd   : > { %3047 = vst [vmem:[%s4212_s17 + $0x50] sm:$0xff] %v2668_v46  ;;  %v3440_v42 = vpop.f32.mrb[51].mxu0 }
 0x400   : > { %v2741_v52 = vpop.f32.mrb[50].mxu1 }
 0x401   : > { %3048 = vst [vmem:[%s4212_s17 + $0x58] sm:$0xff] %v2741_v52  ;;  %v3445_v58 = vpop.f32.mrb[51].mxu1 }
 0x404   : > { %v2814_v31 = vpop.f32.mrb[52].mxu0 }
 0x405   : > { %3049 = vst [vmem:[%s4212_s17 + $0x60] sm:$0xff] %v2814_v31  ;;  %v3450_v33 = vpop.f32.mrb[53].mxu0 }
 0x408   : > { %v2887_v45 = vpop.f32.mrb[52].mxu1 }
 0x409   : > { %3050 = vst [vmem:[%s4212_s17 + $0x68] sm:$0xff] %v2887_v45  ;;  %v3455_v59 = vpop.f32.mrb[53].mxu1 }
 0x40c   : > { %v2960_v53 = vpop.f32.mrb[54].mxu0 }
 0x40d   : > { %3051 = vst [vmem:[%s4212_s17 + $0x70] sm:$0xff] %v2960_v53  ;;  %v3460_v35 = vpop.f32.mrb[55].mxu0 }
 0x410   : > { %v3033_v55 = vpop.f32.mrb[54].mxu1 }
 0x411   : > { %3052 = vst [vmem:[%s4212_s17 + $0x78] sm:$0xff] %v3033_v55  ;;  %v3465_v60 = vpop.f32.mrb[55].mxu1 }
 0x412   : > { %3602 = shalt.err (!%p3599_p3)
}
 0x413   : > { %s3603_s5 = scalar_lea.hbm %s4234_s26, 2048  ;;  %s3607_s8 = scalar_lea.hbm %s4285_s3, 4096 }
 0x414   : > { %p3604_p4 = scmp.ne.s32.totalorder %s4234_s26, %s3603_s5  ;;  %p3608_p9 = scmp.lt.u32.totalorder %s4234_s26, %s4285_s3 }
 0x415   : > { %p3609_p10 = scmp.lt.u32.totalorder %s3607_s8, %s3603_s5  ;;  %p3611_p12 = scmp.lt.u32.totalorder %s3603_s5, %s4234_s26 }
 0x416   : > { %p3605_p7 = pnand %p3604_p4, %p3716_p5 }
 0x417   : > { %p3610_p11 = por %p3609_p10, %p3608_p9 }
 0x418   : > { %p3606_p8 = pneg %p3605_p7 }
 0x419   : > { %p3612_p13 = por %p3611_p12, %p3610_p11 }
 0x41b   : > { %p3613_p0 = pnand %p3612_p13, %p3606_p8 }
 0x41d   : > { %3616 = shalt.err (!%p3613_p0)
}
 0x41e   : > { %s3656_s10 = smov 128   ;;  %s3657_s11 = smov 8  }
 0x41f   : > { %3482 = dma.vmem_to_hbm [thread:$0]  (%p3716_p5), %s4236_s20, 2048, %s4234_s26, %s4241_s27, %s3656_s10, %s3656_s10, %s3657_s11  }
 0x420 PF: > { %p3488_p1 = scmp.ge.s32.totalorder %s3651_s15, 2  ;;  %s3082_s17 = sand.u32 1, %s3639_s12  }
 0x421   : > { %s3083_s19 = scalar_lea.sflag [#allocation3], %s3082_s17 }
 0x422   : > { %p3485_p2 = pnand %p3488_p1, %p3720_p6 }
 0x424   : > { %3634 = dma.done.wait (!%p3485_p2), %s3083_s19, 2048  }
 0x425   : > { %3636 = vsyncadd (!%p3485_p2), %s3083_s19, 4294965248  ;;  %p13_p3 = scmp.ge.s32.totalorder %s3703_s18, 4   ;;  %s4288_s12 = smov %s3643_s13 }
 0x426   : > { %s4289_s13 = smov %s3647_s14  ;;  %s4290_s14 = smov %s3714_s21 }
 0x427   : > { %s4291_s15 = smov %s3703_s18  ;;  %15 = sbr.rel (!%p13_p3) target bundleno = 3 (0x3), region = 67 }
 0x42e   :  { %3088 = vsyncpa [#allocation3], 1 }
 0x42f   :  { %3090 = vsyncpa [#allocation3 + $0x1], 1 }

</bundles_post_ra>
